<compile_context>
chip_gen: v7x
topology: tpu7x:2x2x1
jax: 0.10.0
libtpu: 0.0.40
codegen_flags: <defaults>
</compile_context>

<pallas_src>
import jax
import jax.numpy as jnp
from jax.experimental import pallas as pl
from jax.experimental.pallas import tpu as pltpu


def model_kernel(x_ref, wf_ref, bf_ref, wl_ref, bl_ref, o_ref):
    # x_ref : (128, S)  channels on sublanes, spatial on lanes (natural NCHW reshape)
    # wf_ref: (8, 128)  folded  (conv_avg (0,0)-tap @ conv) / S
    # bf_ref: (8, 1)    folded bias
    # wl_ref: (64, 8)   conv_last weight (out, in)
    # bl_ref: (64, 1)   conv_last bias
    # o_ref : (64, 1)
    s = x_ref.shape[1]
    ones_col = jnp.ones((s, 1), jnp.float32)
    # Spatial sum as an MXU matvec (keeps the XLU slot free): (128,S)@(S,1)->(128,1)
    s_col = jnp.dot(x_ref[...], ones_col, preferred_element_type=jnp.float32)
    # Folded conv -> mean(+1) -> conv_avg: (8,128)@(128,1)->(8,1)
    v3 = jnp.dot(wf_ref[...], s_col, preferred_element_type=jnp.float32) + bf_ref[...]
    v4 = jnp.maximum(v3, 0.0)
    # conv_last (1x1): (64,8)@(8,1)->(64,1)
    o_ref[...] = (
        jnp.dot(wl_ref[...], v4, preferred_element_type=jnp.float32) + bl_ref[...]
    )


@jax.jit
def forward(x_nchw, wf, bf, wl, bl):
    """x_nchw: (1, 128, H, W) f32 -> (1, 64, 1, 1) f32. Whole path in one jit."""
    n, c, h, w = x_nchw.shape
    assert n == 1 and c == 128, "synthetic kernel handles batch 1, C=128 (as in the spec)"
    # Natural NCHW -> (C, H*W): a pure reshape, no HBM transpose pass.
    x2d = x_nchw.reshape(c, h * w)

    vmem = pl.BlockSpec(memory_space=pltpu.MemorySpace.VMEM)
    out_col = pl.pallas_call(
        model_kernel,
        out_shape=jax.ShapeDtypeStruct((64, 1), jnp.float32),
        in_specs=[vmem] * 5,
        out_specs=vmem,
    )(x2d, wf, bf, wl, bl)

    # PyTorch layout (N, C_out, 1, 1)
    return out_col.reshape(1, 64, 1, 1)


def make_raw_params(key):
    """Deterministic params with the exact shapes declared in Model.__init__."""
    ks = jax.random.split(key, 6)

    def uinit(k, shape, fan_in):
        bound = 1.0 / jnp.sqrt(jnp.float32(fan_in))
        return jax.random.uniform(k, shape, jnp.float32, -bound, bound)

    # conv:      Conv2d(128, 128, 1)         weight (128, 128, 1, 1), bias (128,)
    w_conv = uinit(ks[0], (128, 128, 1, 1), 128 * 1 * 1)
    b_conv = uinit(ks[1], (128,), 128 * 1 * 1)
    # conv_avg:  Conv2d(128, 8, 8, stride=8) weight (8, 128, 8, 8), bias (8,)
    w_avg = uinit(ks[2], (8, 128, 8, 8), 128 * 8 * 8)
    b_avg = uinit(ks[3], (8,), 128 * 8 * 8)
    # conv_last: Conv2d(8, 64, 1)            weight (64, 8, 1, 1), bias (64,)
    w_last = uinit(ks[4], (64, 8, 1, 1), 8 * 1 * 1)
    b_last = uinit(ks[5], (64,), 8 * 1 * 1)
    return (w_conv, b_conv, w_avg, b_avg, w_last, b_last)


def fold_params(raw_params, spatial_size):
    """Host-side algebraic fold: mean(conv1x1(x)) == conv1x1(mean(x)).

    v3 = W2 @ (W1 @ x_mean + b_conv + 1) + b_avg
       = (W2 @ W1 / S) @ x_sum + (W2 @ (b_conv + 1) + b_avg)
    """
    w_conv, b_conv, w_avg, b_avg, w_last, b_last = raw_params
    W1 = w_conv[:, :, 0, 0]          # (128_out, 128_in)
    W2 = w_avg[:, :, 0, 0]           # (8_out, 128_in) -- (0,0) tap only (see TODO)
    W3 = w_last[:, :, 0, 0]          # (64_out, 8_in)

    wf = (W2 @ W1) / jnp.float32(spatial_size)            # (8, 128)
    bf = (W2 @ (b_conv + 1.0) + b_avg).reshape(8, 1)       # (8, 1)
    wl = W3                                                # (64, 8)
    bl = b_last.reshape(64, 1)                             # (64, 1)
    return wf, bf, wl, bl


def reference(x_nchw, raw_params):
    """Pure-JAX reference of the unfused semantics (sanity check)."""
    w_conv, b_conv, w_avg, b_avg, w_last, b_last = raw_params
    n, c, h, w = x_nchw.shape
    x2d = jnp.transpose(x_nchw[0], (1, 2, 0)).reshape(h * w, c)   # (S, Cin)
    v1 = x2d @ w_conv[:, :, 0, 0].T + b_conv                      # (S, 128)
    v2 = jnp.mean(v1, axis=0, keepdims=True) + 1.0                # (1, 128)
    v3 = v2 @ w_avg[:, :, 0, 0].T + b_avg                         # (1, 8)  (0,0)-tap
    v4 = jnp.maximum(v3, 0.0)
    v5 = v4 @ w_last[:, :, 0, 0].T + b_last                       # (1, 64)
    return v5.reshape(1, 64, 1, 1)


if __name__ == "__main__":
    key = jax.random.PRNGKey(0)
    k_x, k_p = jax.random.split(key)

    # Channels fixed at 128 by the module's convs; spatial kept small (16x16), batch 1.
    x = jax.random.normal(k_x, (1, 128, 16, 16), jnp.float32)
    raw_params = make_raw_params(k_p)
    wf, bf, wl, bl = fold_params(raw_params, spatial_size=16 * 16)

    out = jax.block_until_ready(forward(x, wf, bf, wl, bl))
    ref = jax.block_until_ready(reference(x, raw_params))

    assert out.shape == (1, 64, 1, 1)
    assert jnp.allclose(out, ref, atol=2e-3, rtol=2e-3)

    print("KERNEL_OK")
</pallas_src>

<mosaic_0001>
module attributes {stable_mosaic.version = 11 : i64} {
  func.func @model_kernel(%arg0: memref<128x256xf32, #tpu.memory_space<vmem>>, %arg1: memref<8x128xf32, #tpu.memory_space<vmem>>, %arg2: memref<8x1xf32, #tpu.memory_space<vmem>>, %arg3: memref<64x8xf32, #tpu.memory_space<vmem>>, %arg4: memref<64x1xf32, #tpu.memory_space<vmem>>, %arg5: memref<64x1xf32, #tpu.memory_space<vmem>>) attributes {dimension_semantics = [], scalar_prefetch = 0 : i64, scratch_operands = 0 : i64, tpu.core_type = #tpu.core_type<tc>} {
    %cst = arith.constant 1.000000e+00 : f32
    %0 = vector.broadcast %cst : f32 to vector<256x1xf32>
    %c0 = arith.constant 0 : index
    %c0_0 = arith.constant 0 : index
    %1 = vector.load %arg0[%c0, %c0_0] : memref<128x256xf32, #tpu.memory_space<vmem>>, vector<128x256xf32>
    %cst_1 = arith.constant dense<0.000000e+00> : vector<128x1xf32>
    %2 = tpu.matmul %1, %0, %cst_1 {dimension_numbers = #tpu.dot_dimension_numbers<[1], [0], [0], [1], [0, 0, 1, 1], [], []>} : vector<128x256xf32>, vector<256x1xf32>, vector<128x1xf32> -> vector<128x1xf32>
    %c0_2 = arith.constant 0 : index
    %c0_3 = arith.constant 0 : index
    %3 = vector.load %arg1[%c0_2, %c0_3] : memref<8x128xf32, #tpu.memory_space<vmem>>, vector<8x128xf32>
    %cst_4 = arith.constant dense<0.000000e+00> : vector<8x1xf32>
    %4 = tpu.matmul %3, %2, %cst_4 {dimension_numbers = #tpu.dot_dimension_numbers<[1], [0], [0], [1], [0, 0, 1, 1], [], []>} : vector<8x128xf32>, vector<128x1xf32>, vector<8x1xf32> -> vector<8x1xf32>
    %c0_5 = arith.constant 0 : index
    %c0_6 = arith.constant 0 : index
    %5 = vector.load %arg2[%c0_5, %c0_6] : memref<8x1xf32, #tpu.memory_space<vmem>>, vector<8x1xf32>
    %6 = arith.addf %4, %5 : vector<8x1xf32>
    %cst_7 = arith.constant 0.000000e+00 : f32
    %7 = vector.broadcast %cst_7 : f32 to vector<8x1xf32>
    %8 = arith.maximumf %6, %7 : vector<8x1xf32>
    %c0_8 = arith.constant 0 : index
    %c0_9 = arith.constant 0 : index
    %9 = vector.load %arg3[%c0_8, %c0_9] : memref<64x8xf32, #tpu.memory_space<vmem>>, vector<64x8xf32>
    %cst_10 = arith.constant dense<0.000000e+00> : vector<64x1xf32>
    %10 = tpu.matmul %9, %8, %cst_10 {dimension_numbers = #tpu.dot_dimension_numbers<[1], [0], [0], [1], [0, 0, 1, 1], [], []>} : vector<64x8xf32>, vector<8x1xf32>, vector<64x1xf32> -> vector<64x1xf32>
    %c0_11 = arith.constant 0 : index
    %c0_12 = arith.constant 0 : index
    %11 = vector.load %arg4[%c0_11, %c0_12] : memref<64x1xf32, #tpu.memory_space<vmem>>, vector<64x1xf32>
    %12 = arith.addf %10, %11 : vector<64x1xf32>
    %c0_13 = arith.constant 0 : index
    %c0_14 = arith.constant 0 : index
    %13 = vector.load %arg5[%c0_13, %c0_14] : memref<64x1xf32, #tpu.memory_space<vmem>>, vector<64x1xf32>
    tpu.vector_store %arg5[%c0_13, %c0_14], %12 {strides = array<i32>} : memref<64x1xf32, #tpu.memory_space<vmem>>, vector<64x1xf32>,
    return
  }
}

</mosaic_0001>

<bundles_post_ra>
// kernel: forward.1
= control target key start
LH: loop header
LB: loop body
LE: loop exit
PB: predicated region body
PF: predicated region fallthrough
CT: control target
= control target key end

     0   :  { %v636_v0 = vmov 1.0|1.0   ;;  %v637_v33 = vmov 0.0|0.0   ;;  %vm638_vm0 = vmmov 0   ;;  %v639_v34 = vmov 0.0   ;;  %s868_s0 = inlined_call_operand.vmem [shape: f32[128,256], index: 0, kind: input, shape index: {}]   ;;  %s869_s1 = inlined_call_operand.vmem [shape: f32[8,128], index: 1, kind: input, shape index: {}]   ;;  %s870_s3 = inlined_call_operand.vmem [shape: f32[64,8], index: 3, kind: input, shape index: {}]   ;;  %s871_s2 = inlined_call_operand.vmem [shape: f32[8,1], index: 2, kind: input, shape index: {}]   ;;  %s872_s4 = inlined_call_operand.vmem [shape: f32[64,1], index: 4, kind: input, shape index: {}]   ;;  %s873_s5 = inlined_call_operand.vmem [shape: f32[64,1], index: 5, kind: output, shape index: {}]  }
   0x1   :  { %592 = vmatprep.subr.bf16.mxu0 %v636_v0  ;;  %v21_v1 = vld [vmem:[%s868_s0 + $0x8] sm:$0xff]  ;;  %v20_v2 = vld [vmem:[%s868_s0] sm:$0xff]  ;;  %v23_v3 = vld [vmem:[%s868_s0 + $0x18] sm:$0xff]  ;;  %608 = vmatprep.subr.bf16.mxu1 %v637_v33  ;;  %vm286_vm1 = vcmask 64512   ;;  %vm416_vm2 = vcmask 7168  }
   0x2   :  { %593 = vmatpush3.bf16.msra.mxu0 %v636_v0  ;;  %116 = vmatprep.mubr.f32.mxu0 %v21_v1  ;;  %v22_v4 = vld [vmem:[%s868_s0 + $0x10] sm:$0xff]  ;;  %v25_v5 = vld [vmem:[%s868_s0 + $0x28] sm:$0xff]  ;;  %v24_v6 = vld [vmem:[%s868_s0 + $0x20] sm:$0xff] }
   0x3   :  { %594 = vmatprep.subr.bf16.mxu0 %v636_v0  ;;  %v27_v7 = vld [vmem:[%s868_s0 + $0x38] sm:$0xff]  ;;  %v26_v8 = vld [vmem:[%s868_s0 + $0x30] sm:$0xff]  ;;  %v29_v9 = vld [vmem:[%s868_s0 + $0x48] sm:$0xff]  ;;  %575 = vmatprep.mubr.msk.f32.mxu1 %vm638_vm0, %v639_v34 }
   0x4   :  { %v28_v10 = vld [vmem:[%s868_s0 + $0x40] sm:$0xff]  ;;  %v31_v11 = vld [vmem:[%s868_s0 + $0x58] sm:$0xff]  ;;  %v30_v12 = vld [vmem:[%s868_s0 + $0x50] sm:$0xff] }
   0x5   :  { %v33_v13 = vld [vmem:[%s868_s0 + $0x68] sm:$0xff]  ;;  %v32_v14 = vld [vmem:[%s868_s0 + $0x60] sm:$0xff]  ;;  %v35_v15 = vld [vmem:[%s868_s0 + $0x78] sm:$0xff] }
   0x6   :  { %595 = vmatpush3.bf16.msra.mxu0 %v636_v0  ;;  %v34_v16 = vld [vmem:[%s868_s0 + $0x70] sm:$0xff]  ;;  %v37_v17 = vld [vmem:[%s868_s0 + $0x88] sm:$0xff]  ;;  %v36_v18 = vld [vmem:[%s868_s0 + $0x80] sm:$0xff] }
   0x7   :  { %596 = vmatprep.subr.bf16.mxu0 %v636_v0  ;;  %v39_v19 = vld [vmem:[%s868_s0 + $0x98] sm:$0xff]  ;;  %v38_v20 = vld [vmem:[%s868_s0 + $0x90] sm:$0xff]  ;;  %v41_v21 = vld [vmem:[%s868_s0 + $0xa8] sm:$0xff] }
   0x8   :  { %v40_v22 = vld [vmem:[%s868_s0 + $0xa0] sm:$0xff]  ;;  %v43_v23 = vld [vmem:[%s868_s0 + $0xb8] sm:$0xff]  ;;  %v42_v24 = vld [vmem:[%s868_s0 + $0xb0] sm:$0xff] }
   0x9   :  { %v45_v25 = vld [vmem:[%s868_s0 + $0xc8] sm:$0xff]  ;;  %v44_v26 = vld [vmem:[%s868_s0 + $0xc0] sm:$0xff]  ;;  %v47_v27 = vld [vmem:[%s868_s0 + $0xd8] sm:$0xff] }
   0xa   :  { %597 = vmatpush3.bf16.msra.mxu0 %v636_v0  ;;  %v46_v28 = vld [vmem:[%s868_s0 + $0xd0] sm:$0xff]  ;;  %v49_v29 = vld [vmem:[%s868_s0 + $0xe8] sm:$0xff]  ;;  %v48_v30 = vld [vmem:[%s868_s0 + $0xe0] sm:$0xff] }
   0xb   :  { %598 = vmatprep.subr.bf16.mxu0 %v636_v0  ;;  %v51_v31 = vld [vmem:[%s868_s0 + $0xf8] sm:$0xff]  ;;  %v50_v32 = vld [vmem:[%s868_s0 + $0xf0] sm:$0xff]  ;;  %v271_v34 = vld [vmem:[%s870_s3 + $0x8] sm:$0xff] }
   0xe   :  { %599 = vmatpush3.bf16.msra.mxu0 %v636_v0 }
   0xf   :  { %600 = vmatprep.subr.bf16.mxu0 %v636_v0 }
  0x12   :  { %601 = vmatpush3.bf16.msra.mxu0 %v636_v0 }
  0x13   :  { %602 = vmatprep.subr.bf16.mxu0 %v636_v0 }
  0x16   :  { %603 = vmatpush3.bf16.msra.mxu0 %v636_v0 }
  0x17   :  { %604 = vmatprep.subr.bf16.mxu0 %v636_v0 }
  0x1a   :  { %605 = vmatpush3.bf16.msra.mxu0 %v636_v0 }
  0x1b   :  { %606 = vmatprep.subr.bf16.mxu0 %v636_v0 }
  0x1e   :  { %607 = vmatpush3.bf16.msra.mxu0 %v636_v0 }
  0x21   :  { %117 = vmatmul.mubr.f32.vlgmr.msra.gmra.mrb[0].mxu0 %v20_v2 }
  0x22   :  { %121 = vmatprep.mubr.f32.mxu0 %v23_v3 }
  0x25   :  { %122 = vmatmul.mubr.f32.gmra.mrb[2].mxu0 %v22_v4 }
  0x26   :  { %126 = vmatprep.mubr.f32.mxu0 %v25_v5 }
  0x29   :  { %127 = vmatmul.mubr.f32.gmra.mrb[4].mxu0 %v24_v6 }
  0x2a   :  { %131 = vmatprep.mubr.f32.mxu0 %v27_v7 }
  0x2d   :  { %132 = vmatmul.mubr.f32.gmra.mrb[6].mxu0 %v26_v8 }
  0x2e   :  { %136 = vmatprep.mubr.f32.mxu0 %v29_v9 }
  0x31   :  { %137 = vmatmul.mubr.f32.gmra.mrb[8].mxu0 %v28_v10 }
  0x32   :  { %141 = vmatprep.mubr.f32.mxu0 %v31_v11 }
  0x35   :  { %142 = vmatmul.mubr.f32.gmra.mrb[10].mxu0 %v30_v12 }
  0x36   :  { %146 = vmatprep.mubr.f32.mxu0 %v33_v13 }
  0x39   :  { %147 = vmatmul.mubr.f32.gmra.mrb[12].mxu0 %v32_v14 }
  0x3a   :  { %151 = vmatprep.mubr.f32.mxu0 %v35_v15 }
  0x3d   :  { %152 = vmatmul.mubr.f32.gmra.mrb[14].mxu0 %v34_v16 }
  0x3e   :  { %156 = vmatprep.mubr.f32.mxu0 %v37_v17 }
  0x41   :  { %157 = vmatmul.mubr.f32.gmra.mrb[16].mxu0 %v36_v18 }
  0x42   :  { %161 = vmatprep.mubr.f32.mxu0 %v39_v19 }
  0x45   :  { %162 = vmatmul.mubr.f32.gmra.mrb[18].mxu0 %v38_v20 }
  0x46   :  { %166 = vmatprep.mubr.f32.mxu0 %v41_v21 }
  0x49   :  { %167 = vmatmul.mubr.f32.gmra.mrb[20].mxu0 %v40_v22 }
  0x4a   :  { %171 = vmatprep.mubr.f32.mxu0 %v43_v23 }
  0x4d   :  { %172 = vmatmul.mubr.f32.gmra.mrb[22].mxu0 %v42_v24 }
  0x4e   :  { %176 = vmatprep.mubr.f32.mxu0 %v45_v25 }
  0x51   :  { %177 = vmatmul.mubr.f32.gmra.mrb[24].mxu0 %v44_v26 }
  0x52   :  { %181 = vmatprep.mubr.f32.mxu0 %v47_v27  ;;  %v197_v27 = vld [vmem:[%s869_s1] sm:$0xff] }
  0x55   :  { %182 = vmatmul.mubr.f32.gmra.mrb[26].mxu0 %v46_v28  ;;  %v270_v28 = vld [vmem:[%s870_s3] sm:$0xff] }
  0x56   :  { %186 = vmatprep.mubr.f32.mxu0 %v49_v29  ;;  %v198_v29 = vld [vmem:[%s871_s2] sm:$0xff] }
  0x59   :  { %187 = vmatmul.mubr.f32.gmra.mrb[28].mxu0 %v48_v30 }
  0x5a   :  { %191 = vmatprep.mubr.f32.mxu0 %v51_v31 }
  0x5d   :  { %192 = vmatmul.mubr.f32.gmra.mrb[30].mxu0 %v50_v32 }
  0xf4   :  { %v469_v35 = vpop.f32.mrb[0].mxu0 }
  0xf5   :  { %v470_v36 = vpop.f32.mrb[1].mxu0 }
  0xf6   :  { %v471_v37 = vadd.f32 %v470_v36, %v469_v35  ;;  %v272_v35 = vld [vmem:[%s870_s3 + $0x10] sm:$0xff]  ;;  %v273_v36 = vld [vmem:[%s870_s3 + $0x18] sm:$0xff] }
  0xf8   :  { %v472_v38 = vpop.f32.mrb[2].mxu0 }
  0xf9   :  { %v473_v39 = vpop.f32.mrb[3].mxu0 }
  0xfa   :  { %v474_v40 = vadd.f32 %v473_v39, %v472_v38  ;;  %v275_v38 = vld [vmem:[%s870_s3 + $0x28] sm:$0xff]  ;;  %v276_v39 = vld [vmem:[%s870_s3 + $0x30] sm:$0xff] }
  0xfc   :  { %v475_v41 = vpop.f32.mrb[4].mxu0  ;;  %v609_v42 = vpack.c.bf16 %v474_v40, %v471_v37  ;;  %v274_v37 = vld [vmem:[%s870_s3 + $0x20] sm:$0xff]  ;;  %v277_v40 = vld [vmem:[%s870_s3 + $0x38] sm:$0xff] }
  0xfd   :  { %v476_v43 = vpop.f32.mrb[5].mxu0 }
  0xfe   :  { %v477_v44 = vadd.f32 %v476_v43, %v475_v41  ;;  %610 = vmatpush3.bf16.msra.mxu1 %v609_v42  ;;  %v279_v41 = vld [vmem:[%s872_s4 + $0x8] sm:$0xff]  ;;  %v278_v42 = vld [vmem:[%s872_s4] sm:$0xff] }
  0xff   :  { %611 = vmatprep.subr.bf16.mxu1 %v637_v33 }
 0x100   :  { %v478_v45 = vpop.f32.mrb[6].mxu0 }
 0x101   :  { %v479_v46 = vpop.f32.mrb[7].mxu0 }
 0x102   :  { %v480_v47 = vadd.f32 %v479_v46, %v478_v45 }
 0x104   :  { %v612_v48 = vpack.c.bf16 %v480_v47, %v477_v44  ;;  %v481_v49 = vpop.f32.mrb[8].mxu0  ;;  %v281_v47 = vld [vmem:[%s872_s4 + $0x18] sm:$0xff] }
 0x105   :  { %v482_v50 = vpop.f32.mrb[9].mxu0 }
 0x106   :  { %v483_v51 = vadd.f32 %v482_v50, %v481_v49  ;;  %613 = vmatpush3.bf16.msra.mxu1 %v612_v48  ;;  %v280_v48 = vld [vmem:[%s872_s4 + $0x10] sm:$0xff] }
 0x107   :  { %614 = vmatprep.subr.bf16.mxu1 %v637_v33 }
 0x108   :  { %v484_v52 = vpop.f32.mrb[10].mxu0 }
 0x109   :  { %v485_v53 = vpop.f32.mrb[11].mxu0 }
 0x10a   :  { %v486_v54 = vadd.f32 %v485_v53, %v484_v52  ;;  %v283_v53 = vld [vmem:[%s872_s4 + $0x28] sm:$0xff] }
 0x10c   :  { %v615_v55 = vpack.c.bf16 %v486_v54, %v483_v51  ;;  %v487_v56 = vpop.f32.mrb[12].mxu0  ;;  %v282_v54 = vld [vmem:[%s872_s4 + $0x20] sm:$0xff] }
 0x10d   :  { %v488_v57 = vpop.f32.mrb[13].mxu0 }
 0x10e   :  { %v489_v58 = vadd.f32 %v488_v57, %v487_v56  ;;  %616 = vmatpush3.bf16.msra.mxu1 %v615_v55 }
 0x10f   :  { %617 = vmatprep.subr.bf16.mxu1 %v637_v33 }
 0x110   :  { %v490_v59 = vpop.f32.mrb[14].mxu0 }
 0x111   :  { %v491_v60 = vpop.f32.mrb[15].mxu0 }
 0x112   :  { %v492_v61 = vadd.f32 %v491_v60, %v490_v59  ;;  %v285_v59 = vld [vmem:[%s872_s4 + $0x38] sm:$0xff]  ;;  %v284_v60 = vld [vmem:[%s872_s4 + $0x30] sm:$0xff] }
 0x114   :  { %v618_v62 = vpack.c.bf16 %v492_v61, %v489_v58  ;;  %v493_v63 = vpop.f32.mrb[16].mxu0 }
 0x115   :  { %v494_v0 = vpop.f32.mrb[17].mxu0 }
 0x116   :  { %v495_v1 = vadd.f32 %v494_v0, %v493_v63  ;;  %619 = vmatpush3.bf16.msra.mxu1 %v618_v62 }
 0x117   :  { %620 = vmatprep.subr.bf16.mxu1 %v637_v33 }
 0x118   :  { %v496_v2 = vpop.f32.mrb[18].mxu0 }
 0x119   :  { %v497_v3 = vpop.f32.mrb[19].mxu0 }
 0x11a   :  { %v498_v4 = vadd.f32 %v497_v3, %v496_v2 }
 0x11c   :  { %v621_v5 = vpack.c.bf16 %v498_v4, %v495_v1  ;;  %v499_v6 = vpop.f32.mrb[20].mxu0 }
 0x11d   :  { %v500_v7 = vpop.f32.mrb[21].mxu0 }
 0x11e   :  { %v501_v8 = vadd.f32 %v500_v7, %v499_v6  ;;  %622 = vmatpush3.bf16.msra.mxu1 %v621_v5 }
 0x11f   :  { %623 = vmatprep.subr.bf16.mxu1 %v637_v33 }
 0x120   :  { %v502_v9 = vpop.f32.mrb[22].mxu0 }
 0x121   :  { %v503_v10 = vpop.f32.mrb[23].mxu0 }
 0x122   :  { %v504_v11 = vadd.f32 %v503_v10, %v502_v9 }
 0x124   :  { %v624_v12 = vpack.c.bf16 %v504_v11, %v501_v8  ;;  %v505_v13 = vpop.f32.mrb[24].mxu0 }
 0x125   :  { %v506_v14 = vpop.f32.mrb[25].mxu0 }
 0x126   :  { %v507_v15 = vadd.f32 %v506_v14, %v505_v13  ;;  %625 = vmatpush3.bf16.msra.mxu1 %v624_v12 }
 0x127   :  { %626 = vmatprep.subr.bf16.mxu1 %v637_v33 }
 0x128   :  { %v508_v16 = vpop.f32.mrb[26].mxu0 }
 0x129   :  { %v509_v17 = vpop.f32.mrb[27].mxu0 }
 0x12a   :  { %v510_v18 = vadd.f32 %v509_v17, %v508_v16 }
 0x12c   :  { %v627_v19 = vpack.c.bf16 %v510_v18, %v507_v15  ;;  %v511_v20 = vpop.f32.mrb[28].mxu0 }
 0x12d   :  { %v512_v21 = vpop.f32.mrb[29].mxu0 }
 0x12e   :  { %v513_v22 = vadd.f32 %v512_v21, %v511_v20  ;;  %628 = vmatpush3.bf16.msra.mxu1 %v627_v19 }
 0x12f   :  { %629 = vmatprep.subr.bf16.mxu1 %v637_v33 }
 0x130   :  { %v514_v23 = vpop.f32.mrb[30].mxu0 }
 0x131   :  { %v515_v24 = vpop.f32.mrb[31].mxu0 }
 0x132   :  { %v516_v25 = vadd.f32 %v515_v24, %v514_v23 }
 0x134   :  { %v630_v26 = vpack.c.bf16 %v516_v25, %v513_v22 }
 0x136   :  { %631 = vmatpush3.bf16.msra.mxu1 %v630_v26 }
 0x139   :  { %576 = vmatmul.mubr.f32.vlgmr.msra.gmra.mrb[0].mxu1 %v197_v27 }
 0x13a   :  { %580 = vmatprep.mubr.msk.f32.mxu1 %vm286_vm1, %v270_v28 }
 0x20c   :  { %v265_v30 = vpop.f32.mrb[0].mxu1 }
 0x20d   :  { %v266_v31 = vadd.f32 %v265_v30, %v198_v29  ;;  %v577_v32 = vpop.f32.mrb[1].mxu1 }
 0x20f   :  { %v269_v33 = vmax.f32 %v266_v31, 0.0 }
 0x211   :  { %578 = vmatprep.subr.mxu1 %v269_v33 }
 0x212   :  { %579 = vmatpush3.msra.mxu1 %v269_v33 }
 0x213   :  { %581 = vmatmul.mubr.msk.f32.vlgmr.msra.gmra.mrb[2].mxu1 %vm286_vm1, %v271_v34 }
 0x214   :  { %583 = vmatprep.mubr.msk.f32.mxu1 %vm286_vm1, %v272_v35 }
 0x217   :  { %584 = vmatmul.mubr.msk.f32.gmra.mrb[4].mxu1 %vm286_vm1, %v273_v36 }
 0x218   :  { %586 = vmatprep.mubr.msk.f32.mxu1 %vm286_vm1, %v274_v37 }
 0x21b   :  { %587 = vmatmul.mubr.msk.f32.gmra.mrb[6].mxu1 %vm286_vm1, %v275_v38 }
 0x21c   :  { %589 = vmatprep.mubr.msk.f32.mxu1 %vm286_vm1, %v276_v39 }
 0x21f   :  { %590 = vmatmul.mubr.msk.f32.gmra.mrb[8].mxu1 %vm286_vm1, %v277_v40 }
 0x2e6   :  { %v582_v43 = vpop.f32.mrb[2].mxu1 }
 0x2e7   :  { %v383_v44 = vadd.f32 %v582_v43, %v279_v41  ;;  %v377_v45 = vpop.f32.mrb[3].mxu1 }
 0x2e8   :  { %v378_v46 = vadd.f32 %v377_v45, %v278_v42 }
 0x2e9   :  { %418 = vst.msk [vmem:[%s873_s5 + $0x8] sm:$0xff] %vm416_vm2, %v383_v44 }
 0x2ea   :  { %417 = vst.msk [vmem:[%s873_s5] sm:$0xff] %vm416_vm2, %v378_v46  ;;  %v585_v49 = vpop.f32.mrb[4].mxu1 }
 0x2eb   :  { %v393_v50 = vadd.f32 %v585_v49, %v281_v47  ;;  %v387_v51 = vpop.f32.mrb[5].mxu1 }
 0x2ec   :  { %v388_v52 = vadd.f32 %v387_v51, %v280_v48 }
 0x2ed   :  { %420 = vst.msk [vmem:[%s873_s5 + $0x18] sm:$0xff] %vm416_vm2, %v393_v50 }
 0x2ee   :  { %419 = vst.msk [vmem:[%s873_s5 + $0x10] sm:$0xff] %vm416_vm2, %v388_v52  ;;  %v588_v55 = vpop.f32.mrb[6].mxu1 }
 0x2ef   :  { %v403_v56 = vadd.f32 %v588_v55, %v283_v53  ;;  %v397_v57 = vpop.f32.mrb[7].mxu1 }
 0x2f0   :  { %v398_v58 = vadd.f32 %v397_v57, %v282_v54 }
 0x2f1   :  { %422 = vst.msk [vmem:[%s873_s5 + $0x28] sm:$0xff] %vm416_vm2, %v403_v56 }
 0x2f2   :  { %421 = vst.msk [vmem:[%s873_s5 + $0x20] sm:$0xff] %vm416_vm2, %v398_v58  ;;  %v591_v61 = vpop.f32.mrb[8].mxu1 }
 0x2f3   :  { %v413_v62 = vadd.f32 %v591_v61, %v285_v59  ;;  %v407_v63 = vpop.f32.mrb[9].mxu1 }
 0x2f4   :  { %v408_v0 = vadd.f32 %v407_v63, %v284_v60 }
 0x2f5   :  { %424 = vst.msk [vmem:[%s873_s5 + $0x38] sm:$0xff] %vm416_vm2, %v413_v62 }
 0x2f6   :  { %423 = vst.msk [vmem:[%s873_s5 + $0x30] sm:$0xff] %vm416_vm2, %v408_v0 }

</bundles_post_ra>
